<compile_context>
chip_gen: v7x
topology: tpu7x:2x2x1
jax: 0.10.0
libtpu: 0.0.40
codegen_flags: <defaults>
</compile_context>

<pallas_src>
import functools

import jax
import jax.numpy as jnp
from jax.experimental import pallas as pl
from jax.experimental.pallas import tpu as pltpu

HIDDEN = 128


def _round_up(x, m):
    return ((x + m - 1) // m) * m


def _actor_kernel(x_ref, w1_ref, b1_ref, wh_ref, bh_ref, out_ref, *,
                  action_size, compute_dtype):
    # fc1 + ReLU: MXU matmul in compute_dtype, f32 accumulation + epilogue.
    x = x_ref[...].astype(compute_dtype)
    h = jnp.dot(x, w1_ref[...], preferred_element_type=jnp.float32)
    h = jnp.maximum(h + b1_ref[...], 0.0)                       # (Bt, 128) f32

    # Fused heads: cols [0, A) = mean head (0.001 already folded into the
    # weights/bias), cols [A, 2A) = std logits.  Single MXU push, one
    # (Bt, 2A) f32 result slab.
    y = jnp.dot(h.astype(compute_dtype), wh_ref[...],
                preferred_element_type=jnp.float32) + bh_ref[...]

    # exp kept only for the std columns; exp runs on the EUP slot and the
    # select on the VPU, so the epilogue is essentially free.  (Forward-only:
    # the discarded exp(mean-cols) is the classic NaN-gradient trap if a
    # custom VJP is ever added — compute exp on the std half only there.)
    cols = jax.lax.broadcasted_iota(jnp.int32, y.shape, 1)
    out_ref[...] = jnp.where(cols < action_size, y, jnp.exp(y))


def actor_forward(state, params, *, block_b=2048, compute_dtype=jnp.bfloat16):
    """state: (B, feature_size).  Returns (mean, std), each (B, A) float32.

    compute_dtype is the MXU input dtype (accumulation / epilogue stay f32).
    Use compute_dtype=jnp.float32 for bit-faithful parity with the PyTorch
    module; bf16 (default) halves the dominant HBM read when the caller
    supplies bf16 state.  For tiny acting batches prefer actor_reference.
    """
    B, F = state.shape
    A2 = params["wh"].shape[1]
    A = A2 // 2

    # Batch tile: as large as block_b (amortise per-step pipeline overhead),
    # multiple of 8 (f32 sublane), but <= ceil(B/2) so the "parallel" batch
    # axis has at least 2 steps (both v7x TensorCores get work).
    tile = min(block_b, _round_up(pl.cdiv(B, 2), 8))
    tile = max(8, _round_up(tile, 8))
    grid = (pl.cdiv(B, tile),)

    # Grid-invariant weights in the compute dtype (tiny, one-off casts);
    # biases stay f32 for the epilogue.
    w1 = params["w1"].astype(compute_dtype)
    wh = params["wh"].astype(compute_dtype)
    b1 = params["b1"]
    bh = params["bh"]

    # VMEM budget guard for very large block_b sweeps (v7x: 64 MiB physical,
    # 32 MiB scoped default).  Double-buffered input tile + output tile.
    cp_kwargs = dict(dimension_semantics=("parallel",))
    est_vmem = 2 * tile * (F * state.dtype.itemsize + A2 * 4)
    if est_vmem > 24 * 1024 * 1024:
        cp_kwargs["vmem_limit_bytes"] = int(2 * est_vmem)

    kernel = functools.partial(_actor_kernel, action_size=A,
                               compute_dtype=compute_dtype)
    out = pl.pallas_call(
        kernel,
        out_shape=jax.ShapeDtypeStruct((B, A2), jnp.float32),
        grid=grid,
        in_specs=[
            pl.BlockSpec((tile, F), lambda i: (i, 0)),       # state batch tile
            # Grid-invariant blocks below: same block index every step, so the
            # pipeline keeps them resident (no per-step DMA re-issue).
            pl.BlockSpec((F, HIDDEN), lambda i: (0, 0)),     # w1
            pl.BlockSpec((1, HIDDEN), lambda i: (0, 0)),     # b1
            pl.BlockSpec((HIDDEN, A2), lambda i: (0, 0)),    # fused head weights
            pl.BlockSpec((1, A2), lambda i: (0, 0)),         # fused head biases
        ],
        out_specs=pl.BlockSpec((tile, A2), lambda i: (i, 0)),
        compiler_params=pltpu.CompilerParams(**cp_kwargs),
    )(state, w1, b1, wh, bh)

    mean = out[:, :A]
    std = out[:, A:]
    return mean, std


def init_actor_params(key, feature_size, action_size):
    """PyTorch-style Linear init: U(-1/sqrt(fan_in), 1/sqrt(fan_in)).

    Also builds the fused / pre-scaled head params used by the kernel.
    """
    def linear(key, fan_in, fan_out):
        kw, kb = jax.random.split(key)
        bound = 1.0 / jnp.sqrt(jnp.float32(fan_in))
        w = jax.random.uniform(kw, (fan_in, fan_out), jnp.float32, -bound, bound)
        b = jax.random.uniform(kb, (1, fan_out), jnp.float32, -bound, bound)
        return w, b

    k1, k2, k3 = jax.random.split(key, 3)
    w1, b1 = linear(k1, feature_size, HIDDEN)
    wm, bm = linear(k2, HIDDEN, action_size)
    ws, bs = linear(k3, HIDDEN, action_size)
    # fc2 exists in __init__ but is unused in forward(); omitted from the kernel.
    # Fuse the two heads and fold the constant 0.001 mean scale into wm/bm.
    wh = jnp.concatenate([0.001 * wm, ws], axis=1)   # (128, 2*A)
    bh = jnp.concatenate([0.001 * bm, bs], axis=1)   # (1, 2*A)
    return {"w1": w1, "b1": b1,
            "wm": wm, "bm": bm, "ws": ws, "bs": bs,   # raw (reference)
            "wh": wh, "bh": bh}                        # fused (kernel)


def actor_reference(state, params):
    """Plain-JAX f32 reference matching the original PyTorch forward exactly."""
    h = jnp.maximum(state @ params["w1"] + params["b1"], 0.0)
    mean = 0.001 * (h @ params["wm"] + params["bm"])
    std = jnp.exp(h @ params["ws"] + params["bs"])
    return mean, std


if __name__ == "__main__":
    key = jax.random.PRNGKey(0)
    k_param, k_state = jax.random.split(key)

    batch = 8
    feature_size = 32
    action_size = 8

    params = init_actor_params(k_param, feature_size, action_size)
    state = jax.random.normal(k_state, (batch, feature_size), dtype=jnp.float32)
    ref_mean, ref_std = actor_reference(state, params)

    # 1) f32 compute path: bit-faithful to the PyTorch forward semantics.
    mean, std = actor_forward(state, params, compute_dtype=jnp.float32)
    jax.block_until_ready((mean, std))
    assert mean.shape == (batch, action_size) and std.shape == (batch, action_size)
    assert jnp.allclose(mean, ref_mean, atol=1e-5, rtol=1e-5)
    assert jnp.allclose(std, ref_std, atol=1e-5, rtol=1e-5)
    assert bool(jnp.all(std > 0.0))

    # 2) Default bf16-MXU path on the same small batch (loose tolerance —
    #    deliberate accuracy/perf trade for rollouts).
    mean_bf, std_bf = actor_forward(state, params)
    jax.block_until_ready((mean_bf, std_bf))
    assert jnp.allclose(mean_bf, ref_mean, atol=3e-2, rtol=3e-2)
    assert jnp.allclose(std_bf, ref_std, atol=3e-2, rtol=3e-2)

    # 3) Large ragged batch (not a multiple of the tile or of 8), bf16 state
    #    supplied by the caller (the HBM-traffic win), multi-step grid, no
    #    wrapper-side padding.
    big_B = 1003
    big_state = jax.random.normal(jax.random.PRNGKey(1), (big_B, feature_size),
                                  dtype=jnp.float32).astype(jnp.bfloat16)
    bm_, bs_ = actor_forward(big_state, params)
    jax.block_until_ready((bm_, bs_))
    rbm, rbs = actor_reference(big_state.astype(jnp.float32), params)
    assert bm_.shape == (big_B, action_size) and bs_.shape == (big_B, action_size)
    assert jnp.allclose(bm_, rbm, atol=3e-2, rtol=3e-2)
    assert jnp.allclose(bs_, rbs, atol=3e-2, rtol=3e-2)
    assert bool(jnp.all(bs_ > 0.0))

    print("KERNEL_OK")
</pallas_src>

<mosaic_0001>
module attributes {stable_mosaic.version = 11 : i64} {
  func.func @_actor_kernel(%arg0: i32, %arg1: memref<8x32xf32, #tpu.memory_space<vmem>>, %arg2: memref<32x128xf32, #tpu.memory_space<vmem>>, %arg3: memref<1x128xf32, #tpu.memory_space<vmem>>, %arg4: memref<128x16xf32, #tpu.memory_space<vmem>>, %arg5: memref<1x16xf32, #tpu.memory_space<vmem>>, %arg6: memref<8x16xf32, #tpu.memory_space<vmem>>) attributes {dimension_semantics = [#tpu.dimension_semantics<parallel>], iteration_bounds = array<i64: 1>, scalar_prefetch = 0 : i64, scratch_operands = 0 : i64, tpu.core_type = #tpu.core_type<tc>, window_params = [{transform_indices = @transform_0, window_bounds = array<i64: 8, 32>}, {pipeline_mode = #tpu.pipeline_mode<synchronous>, transform_indices = @transform_1, window_bounds = array<i64: 32, 128>}, {pipeline_mode = #tpu.pipeline_mode<synchronous>, transform_indices = @transform_2, window_bounds = array<i64: 1, 128>}, {pipeline_mode = #tpu.pipeline_mode<synchronous>, transform_indices = @transform_3, window_bounds = array<i64: 128, 16>}, {pipeline_mode = #tpu.pipeline_mode<synchronous>, transform_indices = @transform_4, window_bounds = array<i64: 1, 16>}, {transform_indices = @transform_5, window_bounds = array<i64: 8, 16>}]} {
    %c0 = arith.constant 0 : index
    %c0_0 = arith.constant 0 : index
    %0 = vector.load %arg1[%c0, %c0_0] : memref<8x32xf32, #tpu.memory_space<vmem>>, vector<8x32xf32>
    %c0_1 = arith.constant 0 : index
    %c0_2 = arith.constant 0 : index
    %1 = vector.load %arg2[%c0_1, %c0_2] : memref<32x128xf32, #tpu.memory_space<vmem>>, vector<32x128xf32>
    %cst = arith.constant dense<0.000000e+00> : vector<8x128xf32>
    %2 = tpu.matmul %0, %1, %cst {dimension_numbers = #tpu.dot_dimension_numbers<[1], [0], [0], [1], [0, 0, 1, 1], [], []>} : vector<8x32xf32>, vector<32x128xf32>, vector<8x128xf32> -> vector<8x128xf32>
    %c0_3 = arith.constant 0 : index
    %c0_4 = arith.constant 0 : index
    %3 = vector.load %arg3[%c0_3, %c0_4] : memref<1x128xf32, #tpu.memory_space<vmem>>, vector<1x128xf32>
    %4 = vector.broadcast %3 : vector<1x128xf32> to vector<8x128xf32>
    %5 = arith.addf %2, %4 : vector<8x128xf32>
    %cst_5 = arith.constant 0.000000e+00 : f32
    %6 = vector.broadcast %cst_5 : f32 to vector<8x128xf32>
    %7 = arith.maximumf %5, %6 : vector<8x128xf32>
    %c0_6 = arith.constant 0 : index
    %c0_7 = arith.constant 0 : index
    %8 = vector.load %arg4[%c0_6, %c0_7] : memref<128x16xf32, #tpu.memory_space<vmem>>, vector<128x16xf32>
    %cst_8 = arith.constant dense<0.000000e+00> : vector<8x16xf32>
    %9 = tpu.matmul %7, %8, %cst_8 {dimension_numbers = #tpu.dot_dimension_numbers<[1], [0], [0], [1], [0, 0, 1, 1], [], []>} : vector<8x128xf32>, vector<128x16xf32>, vector<8x16xf32> -> vector<8x16xf32>
    %c0_9 = arith.constant 0 : index
    %c0_10 = arith.constant 0 : index
    %10 = vector.load %arg5[%c0_9, %c0_10] : memref<1x16xf32, #tpu.memory_space<vmem>>, vector<1x16xf32>
    %11 = vector.broadcast %10 : vector<1x16xf32> to vector<8x16xf32>
    %12 = arith.addf %9, %11 : vector<8x16xf32>
    %13 = tpu.iota {dimensions = array<i32: 1>} : vector<8x16xi32>
    %c8_i32 = arith.constant 8 : i32
    %14 = vector.broadcast %c8_i32 : i32 to vector<8x16xi32>
    %15 = arith.cmpi slt, %13, %14 : vector<8x16xi32>
    %16 = math.exp %12 : vector<8x16xf32>
    %17 = arith.select %15, %12, %16 : vector<8x16xi1>, vector<8x16xf32>
    %c0_11 = arith.constant 0 : index
    %c0_12 = arith.constant 0 : index
    %18 = vector.load %arg6[%c0_11, %c0_12] : memref<8x16xf32, #tpu.memory_space<vmem>>, vector<8x16xf32>
    tpu.vector_store %arg6[%c0_11, %c0_12], %17 {strides = array<i32>} : memref<8x16xf32, #tpu.memory_space<vmem>>, vector<8x16xf32>,
    return
  }
  func.func @transform_0(%arg0: i32) -> (i32, i32) {
    %c0_i32 = arith.constant 0 : i32
    %c0_i32_0 = arith.constant 0 : i32
    return %arg0, %c0_i32 : i32, i32
  }
  func.func @transform_1(%arg0: i32) -> (i32, i32) {
    %c0_i32 = arith.constant 0 : i32
    %c0_i32_0 = arith.constant 0 : i32
    %c0_i32_1 = arith.constant 0 : i32
    return %c0_i32, %c0_i32_0 : i32, i32
  }
  func.func @transform_2(%arg0: i32) -> (i32, i32) {
    %c0_i32 = arith.constant 0 : i32
    %c0_i32_0 = arith.constant 0 : i32
    %c0_i32_1 = arith.constant 0 : i32
    return %c0_i32, %c0_i32_0 : i32, i32
  }
  func.func @transform_3(%arg0: i32) -> (i32, i32) {
    %c0_i32 = arith.constant 0 : i32
    %c0_i32_0 = arith.constant 0 : i32
    %c0_i32_1 = arith.constant 0 : i32
    return %c0_i32, %c0_i32_0 : i32, i32
  }
  func.func @transform_4(%arg0: i32) -> (i32, i32) {
    %c0_i32 = arith.constant 0 : i32
    %c0_i32_0 = arith.constant 0 : i32
    %c0_i32_1 = arith.constant 0 : i32
    return %c0_i32, %c0_i32_0 : i32, i32
  }
  func.func @transform_5(%arg0: i32) -> (i32, i32) {
    %c0_i32 = arith.constant 0 : i32
    %c0_i32_0 = arith.constant 0 : i32
    return %arg0, %c0_i32 : i32, i32
  }
}

</mosaic_0001>

<bundles_post_ra>
// kernel: tpu_custom_call.1
= control target key start
LH: loop header
LB: loop body
LE: loop exit
PB: predicated region body
PF: predicated region fallthrough
CT: control target
= control target key end

     0   :  { %v354_v3 = vmov 0.0|0.0   ;;  %vm355_vm0 = vmmov 0   ;;  %v356_v6 = vmov 0.0   ;;  %s469_s0 = inlined_call_operand.vmem [shape: f32[8,32], index: 0, kind: input, shape index: {}]   ;;  %s470_s1 = inlined_call_operand.vmem [shape: f32[32,128], index: 1, kind: input, shape index: {}]   ;;  %s471_s2 = inlined_call_operand.vmem [shape: f32[1,128], index: 2, kind: input, shape index: {}]   ;;  %s472_s3 = inlined_call_operand.vmem [shape: f32[128,16], index: 3, kind: input, shape index: {}]   ;;  %s473_s4 = inlined_call_operand.vmem [shape: f32[1,16], index: 4, kind: input, shape index: {}]   ;;  %s474_s5 = inlined_call_operand.hbm [shape: f32[8,16], index: 5, kind: output, shape index: {}]  }
   0x1   :  { %v22_v0 = vld [vmem:[%s470_s1] sm:$0xff]  ;;  %v23_v1 = vld [vmem:[%s470_s1 + $0x8] sm:$0xff]  ;;  %v24_v2 = vld [vmem:[%s470_s1 + $0x10] sm:$0xff]  ;;  %294 = vmatprep.subr.bf16.mxu0 %v354_v3  ;;  %256 = vmatprep.mubr.msk.f32.mxu0 %vm355_vm0, %v356_v6 }
   0x2   :  { %v295_v4 = vpack.c.bf16 %v23_v1, %v22_v0  ;;  %v25_v5 = vld [vmem:[%s470_s1 + $0x18] sm:$0xff]  ;;  %v108_v7 = vld [vmem:[%s472_s3] sm:$0xff]  ;;  %300 = vmatprep.subr.bf16.mxu1 %v354_v3  ;;  %v109_v8 = vld [vmem:[%s472_s3 + $0x8] sm:$0xff]  ;;  %291 = vmatprep.mubr.msk.f32.mxu1 %vm355_vm0, %v356_v6 }
   0x3   :  { %v110_v9 = vld [vmem:[%s472_s3 + $0x10] sm:$0xff]  ;;  %v111_v10 = vld [vmem:[%s472_s3 + $0x18] sm:$0xff]  ;;  %v298_v11 = vpack.c.bf16 %v25_v5, %v24_v2  ;;  %v301_v12 = vpack.c.bf16 %v109_v8, %v108_v7  ;;  %v112_v14 = vld [vmem:[%s472_s3 + $0x20] sm:$0xff] }
   0x4   :  { %296 = vmatpush3.bf16.msra.mxu0 %v295_v4  ;;  %v304_v13 = vpack.c.bf16 %v111_v10, %v110_v9  ;;  %v113_v15 = vld [vmem:[%s472_s3 + $0x28] sm:$0xff] }
   0x5   :  { %297 = vmatprep.subr.bf16.mxu0 %v354_v3  ;;  %302 = vmatpush3.bf16.msra.mxu1 %v301_v12 }
   0x6   :  { %303 = vmatprep.subr.bf16.mxu1 %v354_v3 }
   0x7   :  { %10 = vsyncpa [#allocation3], 0  ;;  %v21_v16 = vld [vmem:[%s469_s0] sm:$0xff]  ;;  %vm33_vm1 = vcmask 261120   ;;  %v307_v17 = vpack.c.bf16 %v113_v15, %v112_v14  ;;  %v114_v18 = vld [vmem:[%s472_s3 + $0x30] sm:$0xff]  ;;  %v201_v43 = vlaneseq  ;;  %vm207_vm3 = vcmask 130048  }
   0x8   :  { %299 = vmatpush3.bf16.msra.mxu0 %v298_v11  ;;  %v115_v19 = vld [vmem:[%s472_s3 + $0x38] sm:$0xff]  ;;  %v116_v21 = vld [vmem:[%s472_s3 + $0x40] sm:$0xff]  ;;  %v117_v22 = vld [vmem:[%s472_s3 + $0x48] sm:$0xff] }
   0x9   :  { %305 = vmatpush3.bf16.msra.mxu1 %v304_v13  ;;  %v310_v20 = vpack.c.bf16 %v115_v19, %v114_v18  ;;  %v313_v23 = vpack.c.bf16 %v117_v22, %v116_v21  ;;  %v118_v24 = vld [vmem:[%s472_s3 + $0x50] sm:$0xff]  ;;  %v119_v25 = vld [vmem:[%s472_s3 + $0x58] sm:$0xff]  ;;  %v120_v27 = vld [vmem:[%s472_s3 + $0x60] sm:$0xff]  ;;  %v202_v44 = vand.u32 127, %v201_v43 }
   0xa   :  { %306 = vmatprep.subr.bf16.mxu1 %v354_v3  ;;  %v316_v26 = vpack.c.bf16 %v119_v25, %v118_v24  ;;  %v121_v28 = vld [vmem:[%s472_s3 + $0x68] sm:$0xff]  ;;  %v122_v30 = vld [vmem:[%s472_s3 + $0x70] sm:$0xff]  ;;  %v123_v31 = vld [vmem:[%s472_s3 + $0x78] sm:$0xff]  ;;  %s357_s3 = smov [#allocation2]  }
   0xb   :  { %257 = vmatmul.mubr.msk.f32.vlgmr.msra.gmra.mrb[0].mxu0 %vm33_vm1, %v21_v16  ;;  %v319_v29 = vpack.c.bf16 %v121_v28, %v120_v27  ;;  %v322_v32 = vpack.c.bf16 %v123_v31, %v122_v30  ;;  %v223_v33 = vld [vmem:[%s471_s2] ss:$0 sm:$0xff]  ;;  %s215_s11 = sshll.u32 %s357_s3, 4  ;;  %vm203_vm2 = vcmp.lt.s32.totalorder %v202_v44, 8  ;;  %s216_s11 = int_to_ptr.vmem [resolvable:$true] %s215_s11 }
   0xc   :  { %v225_v38 = vld [vmem:[%s473_s4] ss:$0 sm:$0xff]  ;;  %s330_s2 = scalar_lea.vmem %s216_s11, 128  ;;  %p335_p1 = scmp.lt.s32.totalorder %s216_s11, %s216_s11 }
   0xd   :  { %308 = vmatpush3.bf16.msra.mxu1 %v307_v17  ;;  %p331_p0 = scmp.ne.s32.totalorder %s216_s11, %s330_s2  ;;  %p336_p2 = scmp.lt.s32.totalorder %s330_s2, %s330_s2 }
   0xe   :  { %309 = vmatprep.subr.bf16.mxu1 %v354_v3 }
   0xf   :  { %p337_p3 = por %p336_p2, %p335_p1 }
  0x11   :  { %311 = vmatpush3.bf16.msra.mxu1 %v310_v20  ;;  %p338_p4 = pnand %p337_p3, %p331_p0 }
  0x12   :  { %312 = vmatprep.subr.bf16.mxu1 %v354_v3 }
  0x15   :  { %314 = vmatpush3.bf16.msra.mxu1 %v313_v23 }
  0x16   :  { %315 = vmatprep.subr.bf16.mxu1 %v354_v3 }
  0x19   :  { %317 = vmatpush3.bf16.msra.mxu1 %v316_v26 }
  0x1a   :  { %318 = vmatprep.subr.bf16.mxu1 %v354_v3 }
  0x1d   :  { %320 = vmatpush3.bf16.msra.mxu1 %v319_v29 }
  0x1e   :  { %321 = vmatprep.subr.bf16.mxu1 %v354_v3 }
  0x21   :  { %323 = vmatpush3.bf16.msra.mxu1 %v322_v32 }
  0xde   :  { %v103_v34 = vpop.f32.mrb[0].mxu0 }
  0xdf   :  { %v104_v35 = vadd.f32 %v223_v33, %v103_v34  ;;  %v258_v36 = vpop.f32.mrb[1].mxu0 }
  0xe1   :  { %v107_v37 = vmax.f32 %v104_v35, 0.0 }
  0xe3   :  { %292 = vmatmul.mubr.f32.vlgmr.msra.gmra.mrb[0].mxu1 %v107_v37 }
 0x1b6   :  { %v197_v39 = vpop.f32.mrb[0].mxu1 }
 0x1b7   :  { %v198_v40 = vadd.f32 %v225_v38, %v197_v39  ;;  %v293_v41 = vpop.f32.mrb[1].mxu1 }
 0x1b9   :  { %v204_v42 = vmul.f32 1.442695, %v198_v40 }
 0x1bb   :  { %328 = vpow2.f32 %v204_v42 }
 0x1c5   :  { %v329_v45 = vpop.eup %328 }
 0x1c6   :  { %v206_v46 = vsel %vm203_vm2, %v198_v40, %v329_v45 }
 0x1c7   :  { %208 = vst.msk [vmem:[#allocation2] sm:$0xff] %vm207_vm3, %v206_v46 }
 0x1c8   :  { %341 = shalt.err (!%p338_p4)
}
 0x1c9   :  { %s342_s13 = scalar_lea.hbm %s474_s5, 128 }
 0x1ca   :  { %p343_p5 = scmp.ne.s32.totalorder %s474_s5, %s342_s13  ;;  %p346_p6 = scmp.lt.u32.totalorder %s342_s13, %s474_s5 }
 0x1cc   :  { %p348_p7 = pnand %p346_p6, %p343_p5 }
 0x1ce   :  { %351 = shalt.err (!%p348_p7)
}
 0x1cf   :  { %218 = dma.vmem_to_hbm [thread:$0]  %s216_s11, 128, %s474_s5, [#allocation3]  }
 0x1d0   :  { %352 = dma.done.wait [#allocation3], 128  }
 0x1d1   :  { %353 = vsyncadd [#allocation3], 4294967168 }
 0x1d2   :  { %222 = vsyncpa [#allocation3], 1 }

</bundles_post_ra>
